<compile_context>
chip_gen: v7x
topology: tpu7x:2x2x1
jax: 0.10.0
libtpu: 0.0.40
codegen_flags: <defaults>
</compile_context>

<pallas_src>
import functools

import jax
import jax.numpy as jnp
import numpy as np
from jax.experimental import pallas as pl
from jax.experimental.pallas import tpu as pltpu


# ---------------------------------------------------------------------------
# Main (single-pass) kernel: whole (Bt, C, HW) slab fits in VMEM.
# ---------------------------------------------------------------------------
def _se_kernel(x_ref, w1_ref, w2_ref, o_ref, *, inv_hw):
    # x_ref/o_ref: (Bt, C, HW)   w1_ref: (C, Cr)   w2_ref: (Cr, C)
    # Squeeze: global average pool, accumulated in f32 (bf16-safe).
    pooled = jnp.sum(x_ref[...].astype(jnp.float32), axis=-1) * inv_hw  # (Bt, C)

    # Excitation: two bias-free Linears, ReLU / sigmoid, f32 MXU accumulation.
    h = jnp.dot(pooled, w1_ref[...].astype(jnp.float32),
                preferred_element_type=jnp.float32)
    h = jnp.maximum(h, 0.0)                                             # (Bt, Cr)
    y = jnp.dot(h, w2_ref[...].astype(jnp.float32),
                preferred_element_type=jnp.float32)
    y = jax.nn.sigmoid(y)                                               # (Bt, C)

    # Re-scale: re-read x from VMEM (don't hold the tile live across the
    # excitation) and cast the tiny gate down to the input dtype so the
    # dominant elementwise pass stays in native precision.
    # TODO(synk): if a bundle dump ever shows the (Bt, C) lane->sublane
    # relayout of `y` on the critical path (v7x only), restage the gate via a
    # small VMEM scratch with C kept on the lane axis.
    o_ref[...] = x_ref[...] * y.astype(x_ref.dtype)[:, :, None]


# ---------------------------------------------------------------------------
# Fallback kernels (one batch row does not fit VMEM, e.g. huge C*HW on v7x).
# ---------------------------------------------------------------------------
def _pool_kernel(x_ref, p_ref, *, hw, tile_s):
    # x_ref: (1, C, Ts)   p_ref: (1, C, 1) f32 accumulator, resident over s.
    s = pl.program_id(1)

    @pl.when(s == 0)
    def _():
        p_ref[...] = jnp.zeros_like(p_ref)

    lane = jax.lax.broadcasted_iota(jnp.int32, x_ref.shape, 2)
    valid = (s * tile_s + lane) < hw                    # mask OOB tail garbage
    chunk = jnp.where(valid, x_ref[...].astype(jnp.float32), 0.0)
    p_ref[...] += jnp.sum(chunk, axis=-1, keepdims=True)


def _scale_kernel(x_ref, g_ref, o_ref):
    # x_ref/o_ref: (1, C, Ts)   g_ref: (1, C, 1) already in x dtype.
    o_ref[...] = x_ref[...] * g_ref[...]


# ---------------------------------------------------------------------------
# Wrapper
# ---------------------------------------------------------------------------
def _vmem_budget():
    try:
        cap = int(pltpu.get_tpu_info().vmem_capacity_bytes)
    except Exception:
        cap = 64 * 1024 * 1024          # conservative default, safe on all gens
    vmem_limit = min(cap * 3 // 4, cap - 4 * 1024 * 1024)
    max_tile_bytes = cap // 10
    return vmem_limit, max_tile_bytes


def se_attention(x_nchw, w1, w2, *, donate_x=False, force_two_phase=False):
    """SE attention forward. x: (B, C, H, W); w1: (C, C//r); w2: (C//r, C)."""
    B, C, H, W = x_nchw.shape
    Cr = w1.shape[1]
    HW = H * W
    x_flat = x_nchw.reshape(B, C, HW)        # contiguous reshape: no HBM copy

    vmem_limit, max_tile_bytes = _vmem_budget()
    itemsize = x_nchw.dtype.itemsize
    bytes_per_b = C * HW * itemsize
    weight_bytes = (w1.size * w1.dtype.itemsize + w2.size * w2.dtype.itemsize)

    single_pass_ok = (4 * bytes_per_b + 2 * weight_bytes) <= (vmem_limit * 9) // 10

    if single_pass_ok and not force_two_phase:
        # Batch tile: big enough to amortize the ~0.35us/step overhead, small
        # enough that the 'parallel' grid has >= min(B, 8) steps so both v7x
        # TensorCores get work (no-op on single-TC v5e/v6e).
        bt_vmem = max(1, min(B, max_tile_bytes // max(bytes_per_b, 1)))
        bt_grid = max(1, -(-B // min(B, 8)))
        Bt = max(1, min(bt_vmem, bt_grid))
        grid_b = pl.cdiv(B, Bt)

        cost = pl.CostEstimate(
            flops=int(2 * B * C * HW + 4 * B * C * Cr),
            transcendentals=int(B * C),
            bytes_accessed=int(2 * B * bytes_per_b + 2 * weight_bytes),
        )

        out_flat = pl.pallas_call(
            functools.partial(_se_kernel, inv_hw=1.0 / HW),
            out_shape=jax.ShapeDtypeStruct((B, C, HW), x_nchw.dtype),
            grid_spec=pltpu.PrefetchScalarGridSpec(
                num_scalar_prefetch=0,
                grid=(grid_b,),
                in_specs=[
                    pl.BlockSpec((Bt, C, HW), lambda b: (b, 0, 0)),
                    pl.BlockSpec((C, Cr), lambda b: (0, 0)),
                    pl.BlockSpec((Cr, C), lambda b: (0, 0)),
                ],
                out_specs=pl.BlockSpec((Bt, C, HW), lambda b: (b, 0, 0)),
            ),
            compiler_params=pltpu.CompilerParams(
                dimension_semantics=("parallel",),
                vmem_limit_bytes=vmem_limit,
            ),
            cost_estimate=cost,
            input_output_aliases=({0: 0} if donate_x else {}),
        )(x_flat, w1, w2)
        return out_flat.reshape(B, C, H, W)

    # ------------------------------------------------------------------
    # Two-phase fallback: tile the spatial axis (lane-dense, 128-multiple).
    # ------------------------------------------------------------------
    lane_bytes = max(C * itemsize, 1)
    Ts = max(128, (max_tile_bytes // (8 * lane_bytes)) // 128 * 128)
    Ts = min(Ts, -(-HW // 128) * 128)

    grid = (B, pl.cdiv(HW, Ts))

    # Phase A: pooled sums across spatial chunks (one extra read of x).
    pooled = pl.pallas_call(
        functools.partial(_pool_kernel, hw=HW, tile_s=Ts),
        out_shape=jax.ShapeDtypeStruct((B, C, 1), jnp.float32),
        grid_spec=pltpu.PrefetchScalarGridSpec(
            num_scalar_prefetch=0,
            grid=grid,
            in_specs=[pl.BlockSpec((1, C, Ts), lambda b, s: (b, 0, s))],
            out_specs=pl.BlockSpec((1, C, 1), lambda b, s: (b, 0, 0)),
        ),
        compiler_params=pltpu.CompilerParams(
            dimension_semantics=("parallel", "arbitrary"),
            vmem_limit_bytes=vmem_limit,
        ),
    )(x_flat)

    # Tiny excitation MLP on (B, C): left in plain XLA (negligible cost).
    # TODO(synk): could be fused into phase B's first grid step if it ever shows.
    mean = pooled[..., 0] * (1.0 / HW)                              # (B, C) f32
    h = jnp.maximum(mean @ w1.astype(jnp.float32), 0.0)
    gate = jax.nn.sigmoid(h @ w2.astype(jnp.float32))
    gate = gate.astype(x_nchw.dtype)[:, :, None]                    # (B, C, 1)

    # Phase B: channel re-scale sweep over the same spatial chunks.
    out_flat = pl.pallas_call(
        _scale_kernel,
        out_shape=jax.ShapeDtypeStruct((B, C, HW), x_nchw.dtype),
        grid_spec=pltpu.PrefetchScalarGridSpec(
            num_scalar_prefetch=0,
            grid=grid,
            in_specs=[
                pl.BlockSpec((1, C, Ts), lambda b, s: (b, 0, s)),
                pl.BlockSpec((1, C, 1), lambda b, s: (b, 0, 0)),
            ],
            out_specs=pl.BlockSpec((1, C, Ts), lambda b, s: (b, 0, s)),
        ),
        compiler_params=pltpu.CompilerParams(
            dimension_semantics=("parallel", "parallel"),
            vmem_limit_bytes=vmem_limit,
        ),
    )(x_flat, gate)
    return out_flat.reshape(B, C, H, W)


def se_attention_ref(x_nchw, w1, w2):
    # Pure-JAX reference mirroring the PyTorch SEAttention forward.
    pooled = jnp.mean(x_nchw.astype(jnp.float32), axis=(2, 3))      # (B, C)
    h = jnp.maximum(pooled @ w1.astype(jnp.float32), 0.0)           # (B, Cr)
    y = jax.nn.sigmoid(h @ w2.astype(jnp.float32))                  # (B, C)
    return (x_nchw * y.astype(x_nchw.dtype)[:, :, None, None])


if __name__ == "__main__":
    # Small shapes consistent with SEAttention(channel=64, reduction=4).
    B, C, H, W = 2, 64, 16, 16
    reduction = 4
    Cr = C // reduction

    key = jax.random.PRNGKey(0)
    kx, k1, k2 = jax.random.split(key, 3)
    x = jax.random.normal(kx, (B, C, H, W), dtype=jnp.float32)
    # Weights stored already transposed for y @ W (bias-free nn.Linear pair).
    w1 = jax.random.normal(k1, (C, Cr), dtype=jnp.float32) * 0.1
    w2 = jax.random.normal(k2, (Cr, C), dtype=jnp.float32) * 0.1

    ref = jax.block_until_ready(se_attention_ref(x, w1, w2))

    # Main single-pass path.
    out = jax.block_until_ready(se_attention(x, w1, w2))
    np.testing.assert_allclose(np.asarray(out), np.asarray(ref),
                               rtol=1e-5, atol=1e-5)

    # Exercise the two-phase fallback path (used when a batch row > VMEM).
    out2 = jax.block_until_ready(se_attention(x, w1, w2, force_two_phase=True))
    np.testing.assert_allclose(np.asarray(out2), np.asarray(ref),
                               rtol=1e-5, atol=1e-5)

    # TODO(synk): other dispatcher branches (eca/cbam/external/coordatt) are
    # not implemented; only the 'se' attention path is kernelized here.
    print("KERNEL_OK")
</pallas_src>

<mosaic_0001>
module attributes {stable_mosaic.version = 11 : i64} {
  func.func @_se_kernel(%arg0: i32, %arg1: memref<1x64x256xf32, #tpu.memory_space<vmem>>, %arg2: memref<64x16xf32, #tpu.memory_space<vmem>>, %arg3: memref<16x64xf32, #tpu.memory_space<vmem>>, %arg4: memref<1x64x256xf32, #tpu.memory_space<vmem>>) attributes {dimension_semantics = [#tpu.dimension_semantics<parallel>], iteration_bounds = array<i64: 2>, scalar_prefetch = 0 : i64, scratch_operands = 0 : i64, tpu.core_type = #tpu.core_type<tc>, window_params = [{transform_indices = @transform_0, window_bounds = array<i64: 1, 64, 256>}, {pipeline_mode = #tpu.pipeline_mode<synchronous>, transform_indices = @transform_1, window_bounds = array<i64: 64, 16>}, {pipeline_mode = #tpu.pipeline_mode<synchronous>, transform_indices = @transform_2, window_bounds = array<i64: 16, 64>}, {transform_indices = @transform_3, window_bounds = array<i64: 1, 64, 256>}]} {
    %c0 = arith.constant 0 : index
    %c0_0 = arith.constant 0 : index
    %c0_1 = arith.constant 0 : index
    %0 = vector.load %arg1[%c0, %c0_0, %c0_1] : memref<1x64x256xf32, #tpu.memory_space<vmem>>, vector<1x64x256xf32>
    %cst = arith.constant dense<0.000000e+00> : vector<1x64xf32>
    %1 = vector.multi_reduction <add>, %0, %cst [2] : vector<1x64x256xf32> to vector<1x64xf32>
    %cst_2 = arith.constant 3.906250e-03 : f32
    %2 = vector.broadcast %cst_2 : f32 to vector<1x64xf32>
    %3 = arith.mulf %1, %2 : vector<1x64xf32>
    %c0_3 = arith.constant 0 : index
    %c0_4 = arith.constant 0 : index
    %4 = vector.load %arg2[%c0_3, %c0_4] : memref<64x16xf32, #tpu.memory_space<vmem>>, vector<64x16xf32>
    %cst_5 = arith.constant dense<0.000000e+00> : vector<1x16xf32>
    %5 = tpu.matmul %3, %4, %cst_5 {dimension_numbers = #tpu.dot_dimension_numbers<[1], [0], [0], [1], [0, 0, 1, 1], [], []>} : vector<1x64xf32>, vector<64x16xf32>, vector<1x16xf32> -> vector<1x16xf32>
    %cst_6 = arith.constant 0.000000e+00 : f32
    %6 = vector.broadcast %cst_6 : f32 to vector<1x16xf32>
    %7 = arith.maximumf %5, %6 : vector<1x16xf32>
    %c0_7 = arith.constant 0 : index
    %c0_8 = arith.constant 0 : index
    %8 = vector.load %arg3[%c0_7, %c0_8] : memref<16x64xf32, #tpu.memory_space<vmem>>, vector<16x64xf32>
    %cst_9 = arith.constant dense<0.000000e+00> : vector<1x64xf32>
    %9 = tpu.matmul %7, %8, %cst_9 {dimension_numbers = #tpu.dot_dimension_numbers<[1], [0], [0], [1], [0, 0, 1, 1], [], []>} : vector<1x16xf32>, vector<16x64xf32>, vector<1x64xf32> -> vector<1x64xf32>
    %10 = arith.negf %9 : vector<1x64xf32>
    %11 = math.exp %10 : vector<1x64xf32>
    %cst_10 = arith.constant 1.000000e+00 : f32
    %12 = vector.broadcast %cst_10 : f32 to vector<1x64xf32>
    %13 = arith.addf %12, %11 : vector<1x64xf32>
    %14 = arith.divf %12, %13 : vector<1x64xf32>
    %c0_11 = arith.constant 0 : index
    %c0_12 = arith.constant 0 : index
    %c0_13 = arith.constant 0 : index
    %15 = vector.load %arg1[%c0_11, %c0_12, %c0_13] : memref<1x64x256xf32, #tpu.memory_space<vmem>>, vector<1x64x256xf32>
    %16 = vector.shape_cast %14 : vector<1x64xf32> to vector<1x64x1xf32>
    %17 = vector.broadcast %16 : vector<1x64x1xf32> to vector<1x64x256xf32>
    %18 = arith.mulf %15, %17 : vector<1x64x256xf32>
    %c0_14 = arith.constant 0 : index
    %c0_15 = arith.constant 0 : index
    %c0_16 = arith.constant 0 : index
    %19 = vector.load %arg4[%c0_14, %c0_15, %c0_16] : memref<1x64x256xf32, #tpu.memory_space<vmem>>, vector<1x64x256xf32>
    tpu.vector_store %arg4[%c0_14, %c0_15, %c0_16], %18 {strides = array<i32>} : memref<1x64x256xf32, #tpu.memory_space<vmem>>, vector<1x64x256xf32>,
    return
  }
  func.func @transform_0(%arg0: i32) -> (i32, i32, i32) {
    %c0_i32 = arith.constant 0 : i32
    %c0_i32_0 = arith.constant 0 : i32
    %c0_i32_1 = arith.constant 0 : i32
    return %arg0, %c0_i32, %c0_i32_0 : i32, i32, i32
  }
  func.func @transform_1(%arg0: i32) -> (i32, i32) {
    %c0_i32 = arith.constant 0 : i32
    %c0_i32_0 = arith.constant 0 : i32
    %c0_i32_1 = arith.constant 0 : i32
    return %c0_i32, %c0_i32_0 : i32, i32
  }
  func.func @transform_2(%arg0: i32) -> (i32, i32) {
    %c0_i32 = arith.constant 0 : i32
    %c0_i32_0 = arith.constant 0 : i32
    %c0_i32_1 = arith.constant 0 : i32
    return %c0_i32, %c0_i32_0 : i32, i32
  }
  func.func @transform_3(%arg0: i32) -> (i32, i32, i32) {
    %c0_i32 = arith.constant 0 : i32
    %c0_i32_0 = arith.constant 0 : i32
    %c0_i32_1 = arith.constant 0 : i32
    return %arg0, %c0_i32, %c0_i32_0 : i32, i32, i32
  }
}

</mosaic_0001>

<bundles_post_ra>
// kernel: tpu_custom_call.1
= control target key start
LH: loop header
LB: loop body
LE: loop exit
PB: predicated region body
PF: predicated region fallthrough
CT: control target
= control target key end

     0   :  { %8 = vsyncpa [#allocation3], 0  ;;  %s1165_s0 = inlined_call_operand.hbm [shape: f32[2,64,256], index: 0, kind: input, shape index: {}]   ;;  %s1166_s1 = inlined_call_operand.vmem [shape: f32[64,16], index: 1, kind: input, shape index: {}]   ;;  %s1167_s2 = inlined_call_operand.vmem [shape: f32[16,64], index: 2, kind: input, shape index: {}]   ;;  %s1168_s3 = inlined_call_operand.hbm [shape: f32[2,64,256], index: 3, kind: output, shape index: {}]  }
   0x1   :  { %10 = vsyncpa [#allocation3 + $0x1], 0 }
   0x2   :  { %11 = vsyncpa [#allocation4], 0 }
   0x3   :  { %13 = vsyncpa [#allocation4 + $0x1], 0  ;;  %s874_s12 = smov 0   ;;  %s876_s13 = smov 0  }
   0x4   :  { %s878_s14 = smov 0   ;;  %s880_s15 = smov 0  }
   0x5 LB: > { %s895_s16 = sadd.s32 4294967295, %s843_s15   ;;  %s618_s17 = sadd.s32 4294967294, %s843_s15   ;;  %s843_s15 = sphi %s880_s15, %s1181_s15   ;;  %s839_s14 = sphi %s878_s14, %s1180_s14   ;;  %s835_s13 = sphi %s876_s13, %s1179_s13   ;;  %s831_s12 = sphi %s874_s12, %s1178_s12  }
   0x6   : > { %s899_s18 = sadd.s32 1, %s843_s15   ;;  %s26_s19 = sadd.s32 1, %s839_s14 }
   0x7   : > { %s23_s20 = ssub.s32 %s843_s15, %s899_s18  ;;  %p33_p0 = scmp.ne.s32.totalorder %s839_s14, %s835_s13 }
   0x8   : > { %p24_p1 = scmp.eq.s32.totalorder %s23_s20, 0  ;;  %p34_p2 = scmp.eq.s32.totalorder %s843_s15, 0 }
   0x9   : > { %p39_p3 = scmp.ne.s32.totalorder %s835_s13, %s831_s12  ;;  %p40_p4 = scmp.eq.s32.totalorder %s895_s16, 0 }
   0xa   : > { %s911_s21 = scalar_select %p24_p1, %s839_s14, %s26_s19  }
   0xb   : > { %p913_p5 = por %p34_p2, %p33_p0  ;;  %p917_p6 = por %p40_p4, %p39_p3 }
   0xc   : > { %p105_p7 = scmp.eq.s32.totalorder %s895_s16, 1  ;;  %p111_p8 = scmp.eq.s32.totalorder %s618_s17, 1 }
   0xd   : > { %p702_p10 = scmp.lt.s32.totalorder %s843_s15, 2  ;;  %s137_s26 = sand.u32 1, %s839_s14  }
   0xe   : > { %p924_p11 = por %p105_p7, %p33_p0  ;;  %p928_p12 = por %p111_p8, %p39_p3 }
   0xf   : > { %s635_s27 = sshll.u32 %s843_s15, 11  ;;  %s621_s28 = sshll.u32 %s137_s26, 7 }
  0x10   : > { %s1172_s24 = scalar_select %p924_p11, 1, 0 }
  0x11   : > { %s1173_s25 = scalar_select %p928_p12, 1, 0 }
  0x12   : > { %s937_s4 = scalar_lea.hbm %s1165_s0, %s635_s27  ;;  %s141_s5 = scalar_lea.vmem [#allocation2], %s621_s28 }
  0x13   : > { %s148_s6 = sshll.u32 %s141_s5, 4  ;;  %p941_p13 = pnand %p702_p10, %p913_p5  ;;  %s945_s6 = int_to_ptr.vmem [resolvable:$true] %s148_s6 }
  0x14   : > { %s947_s8 = scalar_lea.sflag [#allocation3], %s137_s26  ;;  %s747_s9 = scalar_lea.hbm %s937_s4, 2048 }
  0x15   : > { %p748_p0 = scmp.ne.s32.totalorder %s937_s4, %s747_s9  ;;  %p749_p1 = pneg %p941_p13 }
  0x16   : > { %s752_s17 = scalar_lea.hbm %s1165_s0, 4096  ;;  %p753_p4 = scmp.lt.u32.totalorder %s937_s4, %s1165_s0 }
  0x17   : > { %p750_p2 = pnand %p749_p1, %p748_p0  ;;  %p754_p5 = scmp.lt.u32.totalorder %s752_s17, %s747_s9 }
  0x18   : > { %p756_p8 = scmp.lt.u32.totalorder %s747_s9, %s937_s4 }
  0x19   : > { %p751_p3 = pneg %p750_p2  ;;  %p755_p7 = por %p754_p5, %p753_p4 }
  0x1b   : > { %p757_p10 = por %p756_p8, %p755_p7 }
  0x1d   : > { %p758_p9 = pnand %p757_p10, %p751_p3 }
  0x1f   : > { %761 = shalt.err (!%p758_p9)
}
  0x20   : > { %s762_s22 = scalar_lea.vmem %s945_s6, 2048  ;;  %s845_s26 = smov [#allocation2]  }
  0x21   : > { %p763_p0 = scmp.ne.s32.totalorder %s945_s6, %s762_s22  ;;  %s767_s27 = sshll.u32 %s845_s26, 4  ;;  %s768_s27 = int_to_ptr.vmem [resolvable:$false] %s767_s27 }
  0x22   : > { %s769_s28 = scalar_lea.vmem %s768_s27, 4096  ;;  %p770_p11 = scmp.lt.s32.totalorder %s945_s6, %s768_s27 }
  0x23   : > { %p765_p2 = pnand %p763_p0, %p749_p1  ;;  %p771_p4 = scmp.lt.s32.totalorder %s769_s28, %s762_s22 }
  0x25   : > { %p766_p12 = pneg %p765_p2  ;;  %p772_p5 = por %p771_p4, %p770_p11 }
  0x27   : > { %p773_p7 = pnand %p772_p5, %p766_p12 }
  0x29   : > { %776 = shalt.err (!%p773_p7)
}
  0x2a   : > { %s846_s29 = smov 256   ;;  %s847_s30 = smov 16  }
  0x2b   : > { %697 = dma.hbm_to_vmem [thread:$0]  (!%p941_p13), %s937_s4, 2048, %s945_s6, %s947_s8, %s846_s29, %s846_s29, %s847_s30  }
  0x2c   : > { %p624_p9 = scmp.ge.s32.totalorder %s843_s15, 1  ;;  %p156_p1 = scmp.lt.s32.totalorder %s843_s15, 3 }
  0x2e   : > { %p157_p3 = pnand %p624_p9, %p156_p1 }
  0x2f   : > { %s978_s5 = sand.u32 (!%p157_p3), 1, %s835_s13  }
  0x30   : > { %160 = sbr.rel (%p157_p3) target bundleno = 821 (0x335), region = 32  ;;  %s625_s9 = sshll.u32 (!%p157_p3), %s978_s5, 7 }
  0x31   : > { %s163_s10 = scalar_lea.sflag (!%p157_p3), [#allocation3], %s978_s5  ;;  %s166_s11 = scalar_lea.vmem (!%p157_p3), [#allocation2], %s625_s9 }
  0x37   : > { %822 = dma.done.wait (%p917_p6), %s163_s10, 2048  }
  0x38   : > { %824 = vsyncadd (%p917_p6), %s163_s10, 4294965248  ;;  %v988_v0 = vld [vmem:[%s166_s11] sm:$0xff]  ;;  %v990_v1 = vld [vmem:[%s166_s11 + $0x8] sm:$0xff]  ;;  %v848_v27 = vmov 0.0|0.0   ;;  %vm849_vm0 = vmmov 0   ;;  %v850_v37 = vmov 0.0   ;;  %v253_v38 = vlaneseq }
  0x39   : > { %v992_v2 = vld [vmem:[%s166_s11 + $0x20] sm:$0xff]  ;;  %v205_v3 = vadd.f32 %v990_v1, %v988_v0  ;;  %v996_v4 = vld [vmem:[%s166_s11 + $0x28] sm:$0xff]  ;;  %v998_v5 = vld [vmem:[%s166_s11 + $0x10] sm:$0xff]  ;;  %675 = vmatprep.subr.bf16.mxu0 %v848_v27  ;;  %687 = vmatprep.subr.bf16.mxu1 %v848_v27  ;;  %vm264_vm1 = vcmask 130112   ;;  %vm271_vm2 = vcmask 195712   ;;  %vm278_vm3 = vcmask 261312  }
  0x3a   : > { %v1000_v6 = vld [vmem:[%s166_s11 + $0x18] sm:$0xff]  ;;  %v211_v7 = vadd.f32 %v996_v4, %v992_v2  ;;  %v1004_v8 = vld [vmem:[%s166_s11 + $0x30] sm:$0xff]  ;;  %v1012_v12 = vld [vmem:[%s166_s11 + $0x40] sm:$0xff]  ;;  %665 = vmatprep.mubr.msk.f32.mxu0 %vm849_vm0, %v850_v37  ;;  %672 = vmatprep.mubr.msk.f32.mxu1 %vm849_vm0, %v850_v37  ;;  %v254_v39 = vand.u32 127, %v253_v38  ;;  %v1060_v40 = vshrl.u32 %v253_v38, 7  ;;  %vm285_vm4 = vcmask 326912  }
  0x3b   : > { %v1006_v9 = vld [vmem:[%s166_s11 + $0x38] sm:$0xff]  ;;  %206 = vadd.xlane.f32.xlu0 %v205_v3  ;;  %v208_v10 = vadd.f32 %v1000_v6, %v998_v5  ;;  %v1014_v13 = vld [vmem:[%s166_s11 + $0x48] sm:$0xff]  ;;  %v1016_v14 = vld [vmem:[%s166_s11 + $0x50] sm:$0xff]  ;;  %vm292_vm5 = vcmask 392512   ;;  %vm299_vm6 = vcmask 458112   ;;  %vm306_vm7 = vcmask 523712  }
  0x3c   : > { %212 = vadd.xlane.f32.xlu1 %v211_v7  ;;  %v214_v11 = vadd.f32 %v1006_v9, %v1004_v8  ;;  %v1018_v15 = vld [vmem:[%s166_s11 + $0x58] sm:$0xff]  ;;  %v217_v16 = vadd.f32 %v1014_v13, %v1012_v12  ;;  %v1024_v18 = vld [vmem:[%s166_s11 + $0x60] sm:$0xff]  ;;  %v1026_v19 = vld [vmem:[%s166_s11 + $0x68] sm:$0xff]  ;;  %v259_v41 = vadd.s32 4294967288, %v254_v39  ;;  %v266_v43 = vadd.s32 4294967280, %v254_v39  ;;  %s1084_s8 = scalar_lea.vmem [#allocation5], %s625_s9 }
  0x3d   : > { %v220_v17 = vadd.f32 %v1018_v15, %v1016_v14  ;;  %v1028_v20 = vld [vmem:[%s166_s11 + $0x70] sm:$0xff]  ;;  %v1030_v21 = vld [vmem:[%s166_s11 + $0x78] sm:$0xff]  ;;  %v223_v22 = vadd.f32 %v1026_v19, %v1024_v18  ;;  %v237_v24 = vld [vmem:[%s1166_s1] sm:$0xff]  ;;  %v273_v44 = vadd.s32 4294967272, %v254_v39  ;;  %v257_v46 = vsub.s32 %v254_v39, %v1060_v40  ;;  %s636_s9 = sshll.u32 %s895_s16, 11  ;;  %s545_s17 = sshll.u32 %s1084_s8, 4  ;;  %s1117_s17 = int_to_ptr.vmem [resolvable:$true] %s545_s17 }
  0x3e   : > { %v226_v23 = vadd.f32 %v1030_v21, %v1028_v20  ;;  %v238_v25 = vld [vmem:[%s1166_s1 + $0x8] sm:$0xff]  ;;  %v239_v28 = vld [vmem:[%s1166_s1 + $0x10] sm:$0xff]  ;;  %v240_v29 = vld [vmem:[%s1166_s1 + $0x18] sm:$0xff]  ;;  %v262_v48 = vsub.s32 %v259_v41, %v1060_v40  ;;  %v280_v49 = vadd.s32 4294967264, %v254_v39  ;;  %v269_v50 = vsub.s32 %v266_v43, %v1060_v40  ;;  %s1115_s22 = scalar_lea.hbm %s1168_s3, %s636_s9  ;;  %s532_s16 = scalar_lea.sflag [#allocation4], %s978_s5 }
  0x3f   : > { %209 = vadd.xlane.f32.xlu0 %v208_v10  ;;  %v676_v26 = vpack.c.bf16 %v238_v25, %v237_v24  ;;  %v679_v30 = vpack.c.bf16 %v240_v29, %v239_v28  ;;  %v241_v31 = vld [vmem:[%s1166_s1 + $0x20] sm:$0xff]  ;;  %v242_v32 = vld [vmem:[%s1166_s1 + $0x28] sm:$0xff]  ;;  %v243_v34 = vld [vmem:[%s1166_s1 + $0x30] sm:$0xff]  ;;  %v276_v53 = vsub.s32 %v273_v44, %v1060_v40  ;;  %v287_v54 = vadd.s32 4294967256, %v254_v39  ;;  %s777_s26 = scalar_lea.vmem %s1117_s17, 2048  ;;  %p1175_p11 = scmp.ne.s32.totalorder %s1172_s24, 0 }
  0x40   : > { %215 = vadd.xlane.f32.xlu1 %v214_v11  ;;  %v682_v33 = vpack.c.bf16 %v242_v32, %v241_v31  ;;  %v244_v35 = vld [vmem:[%s1166_s1 + $0x38] sm:$0xff]  ;;  %v283_v60 = vsub.s32 %v280_v49, %v1060_v40  ;;  %v294_v61 = vadd.s32 4294967248, %v254_v39  ;;  %v301_v10 = vadd.s32 4294967240, %v254_v39  ;;  %v382_v39 = vld [vmem:[%s1167_s2] sm:$0xff]  ;;  %v383_v41 = vld [vmem:[%s1167_s2 + $0x8] sm:$0xff]  ;;  %p778_p6 = scmp.ne.s32.totalorder %s1117_s17, %s777_s26  ;;  %s851_s27 = smov [#allocation5]  }
  0x41   : > { %677 = vmatpush3.bf16.msra.mxu0 %v676_v26  ;;  %v685_v36 = vpack.c.bf16 %v244_v35, %v243_v34  ;;  %v290_v7 = vsub.s32 %v287_v54, %v1060_v40  ;;  %vm308_vm8 = vcmask 523264   ;;  %vm384_vm9 = vcmask 130048   ;;  %s781_s28 = sshll.u32 %s851_s27, 4  ;;  %s782_s28 = int_to_ptr.vmem [resolvable:$false] %s781_s28 }
  0x42   : > { %678 = vmatprep.subr.bf16.mxu0 %v848_v27  ;;  %v297_v26 = vsub.s32 %v294_v61, %v1060_v40  ;;  %v304_v29 = vsub.s32 %v301_v10, %v1060_v40  ;;  %p779_p12 = pnand %p778_p6, %p1175_p11  ;;  %s783_s29 = scalar_lea.vmem %s782_s28, 4096 }
  0x43   : > { %218 = vadd.xlane.f32.xlu0 %v217_v16  ;;  %p784_p8 = scmp.lt.s32.totalorder %s1117_s17, %s782_s28  ;;  %p785_p10 = scmp.lt.s32.totalorder %s783_s29, %s777_s26 }
  0x44   : > { %221 = vadd.xlane.f32.xlu1 %v220_v17  ;;  %p780_p13 = pneg %p779_p12 }
  0x45   : > { %680 = vmatpush3.bf16.msra.mxu0 %v679_v30  ;;  %p786_p0 = por %p785_p10, %p784_p8 }
  0x46   : > { %681 = vmatprep.subr.bf16.mxu0 %v848_v27 }
  0x47   : > { %224 = vadd.xlane.f32.xlu0 %v223_v22  ;;  %p787_p2 = pnand %p786_p0, %p780_p13 }
  0x48   : > { %227 = vadd.xlane.f32.xlu1 %v226_v23 }
  0x49   : > { %683 = vmatpush3.bf16.msra.mxu0 %v682_v33 }
  0x4a   : > { %684 = vmatprep.subr.bf16.mxu0 %v848_v27 }
  0x4d   : > { %686 = vmatpush3.bf16.msra.mxu0 %v685_v36 }
  0xc8   : > { %v207_v42 = vpop.xlane.xlu0 %206 }
  0xc9   : > { %v213_v45 = vpop.xlane.xlu1 %212  ;;  %v229_v47 = vmul.f32 0.00390625, %v207_v42  ;;  %v688_v42 = vpack.c.bf16 %v383_v41, %v382_v39 }
  0xca   : > { %v231_v51 = vmul.f32 0.00390625, %v213_v45 }
  0xcb   : > { %v258_v58 = vrot.slane %v229_v47, %v257_v46  ;;  %689 = vmatpush3.bf16.msra.mxu1 %v688_v42 }
  0xcc   : > { %v210_v52 = vpop.xlane.xlu0 %209  ;;  %v270_v62 = vrot.slane %v231_v51, %v269_v50  ;;  %v466_v51 = vsub.s32 0, %v1060_v40 }
  0xcd   : > { %v230_v55 = vmul.f32 0.00390625, %v210_v52  ;;  %v216_v56 = vpop.xlane.xlu1 %215 }
  0xce   : > { %v232_v57 = vmul.f32 0.00390625, %v216_v56 }
  0xcf   : > { %v263_v59 = vrot.slane %v230_v55, %v262_v48 }
  0xd0   : > { %v277_v63 = vrot.slane %v232_v57, %v276_v53  ;;  %v219_v3 = vpop.xlane.xlu0 %218 }
  0xd1   : > { %v265_v11 = vsel %vm264_vm1, %v263_v59, %v258_v58  ;;  %v233_v16 = vmul.f32 0.00390625, %v219_v3  ;;  %v222_v17 = vpop.xlane.xlu1 %221 }
  0xd2   : > { %v272_v22 = vsel %vm271_vm2, %v270_v62, %v265_v11  ;;  %v234_v23 = vmul.f32 0.00390625, %v222_v17 }
  0xd3   : > { %v279_v24 = vsel %vm278_vm3, %v277_v63, %v272_v22  ;;  %v284_v25 = vrot.slane %v233_v16, %v283_v60 }
  0xd4   : > { %v291_v27 = vrot.slane %v234_v23, %v290_v7  ;;  %v225_v28 = vpop.xlane.xlu0 %224 }
  0xd5   : > { %v286_v30 = vsel %vm285_vm4, %v284_v25, %v279_v24  ;;  %v235_v31 = vmul.f32 0.00390625, %v225_v28  ;;  %v228_v32 = vpop.xlane.xlu1 %227 }
  0xd6   : > { %v236_v33 = vmul.f32 0.00390625, %v228_v32  ;;  %v293_v35 = vsel %vm292_vm5, %v291_v27, %v286_v30 }
  0xd7   : > { %v298_v34 = vrot.slane %v235_v31, %v297_v26 }
  0xd8   : > { %v305_v36 = vrot.slane %v236_v33, %v304_v29 }
  0xd9   : > { %v300_v37 = vsel %vm299_vm6, %v298_v34, %v293_v35 }
  0xda   : > { %v307_v38 = vsel %vm306_vm7, %v305_v36, %v300_v37 }
  0xdb   : > { %666 = vmatmul.mubr.msk.f32.vlgmr.msra.gmra.mrb[0].mxu0 %vm308_vm8, %v307_v38 }
 0x1ae   : > { %v377_v43 = vpop.f32.mrb[0].mxu0 }
 0x1af   : > { %v381_v44 = vmax.f32 %v377_v43, 0.0  ;;  %v667_v45 = vpop.f32.mrb[1].mxu0 }
 0x1b1   : > { %673 = vmatmul.mubr.msk.f32.vlgmr.msra.gmra.mrb[0].mxu1 %vm384_vm9, %v381_v44 }
 0x284   : > { %v454_v46 = vpop.f32.mrb[0].mxu1 }
 0x285   : > { %v629_v47 = vmul.f32 -1.442695, %v454_v46  ;;  %v674_v48 = vpop.f32.mrb[1].mxu1 }
 0x287   : > { %743 = vpow2.f32 %v629_v47 }
 0x291   : > { %v744_v49 = vpop.eup %743 }
 0x292   : > { %v461_v50 = vadd.f32 1.0, %v744_v49 }
 0x294   : > { %745 = vrcp.f32 %v461_v50 }
 0x29e   : > { %v746_v52 = vpop.eup %745 }
 0x29f   : > { %v467_v53 = vrot.slane %v746_v52, %v466_v51 }
 0x2a1   : > { %473 = vbcast.lane.b32.xlu1 %v467_v53, 264  ;;  %469 = vbcast.lane.b32.xlu0 %v467_v53, 256 }
 0x2a5   : > { %477 = vbcast.lane.b32.xlu1 %v467_v53, 272  ;;  %485 = vbcast.lane.b32.xlu0 %v467_v53, 288 }
 0x2a9   : > { %481 = vbcast.lane.b32.xlu1 %v467_v53, 280  ;;  %493 = vbcast.lane.b32.xlu0 %v467_v53, 304 }
 0x2ad   : > { %489 = vbcast.lane.b32.xlu1 %v467_v53, 296 }
 0x2b1   : > { %497 = vbcast.lane.b32.xlu1 %v467_v53, 312 }
 0x313   : > { %v474_v54 = vpop.permute.xlu1 %473  ;;  %v470_v55 = vpop.permute.xlu0 %469 }
 0x314   : > { %v501_v56 = vmul.f32 %v474_v54, %v998_v5  ;;  %v502_v57 = vmul.f32 %v474_v54, %v1000_v6  ;;  %v499_v58 = vmul.f32 %v470_v55, %v988_v0  ;;  %v500_v40 = vmul.f32 %v470_v55, %v990_v1 }
 0x316   : > { %517 = vst [vmem:[%s1084_s8 + $0x10] sm:$0xff] %v501_v56  ;;  %518 = vst [vmem:[%s1084_s8 + $0x18] sm:$0xff] %v502_v57 }
 0x317   : > { %515 = vst [vmem:[%s1084_s8] sm:$0xff] %v499_v58  ;;  %516 = vst [vmem:[%s1084_s8 + $0x8] sm:$0xff] %v500_v40  ;;  %v478_v5 = vpop.permute.xlu1 %477  ;;  %v486_v0 = vpop.permute.xlu0 %485 }
 0x318   : > { %v503_v1 = vmul.f32 %v478_v5, %v992_v2  ;;  %v504_v6 = vmul.f32 %v478_v5, %v996_v4  ;;  %v507_v59 = vmul.f32 %v486_v0, %v1012_v12  ;;  %v508_v60 = vmul.f32 %v486_v0, %v1014_v13 }
 0x31a   : > { %519 = vst [vmem:[%s1084_s8 + $0x20] sm:$0xff] %v503_v1  ;;  %520 = vst [vmem:[%s1084_s8 + $0x28] sm:$0xff] %v504_v6 }
 0x31b   : > { %523 = vst [vmem:[%s1084_s8 + $0x40] sm:$0xff] %v507_v59  ;;  %524 = vst [vmem:[%s1084_s8 + $0x48] sm:$0xff] %v508_v60  ;;  %v482_v61 = vpop.permute.xlu1 %481  ;;  %v494_v62 = vpop.permute.xlu0 %493 }
 0x31c   : > { %v505_v2 = vmul.f32 %v482_v61, %v1004_v8  ;;  %v506_v63 = vmul.f32 %v482_v61, %v1006_v9  ;;  %v511_v4 = vmul.f32 %v494_v62, %v1024_v18  ;;  %v512_v12 = vmul.f32 %v494_v62, %v1026_v19 }
 0x31e   : > { %521 = vst [vmem:[%s1084_s8 + $0x30] sm:$0xff] %v505_v2  ;;  %522 = vst [vmem:[%s1084_s8 + $0x38] sm:$0xff] %v506_v63 }
 0x31f   : > { %527 = vst [vmem:[%s1084_s8 + $0x60] sm:$0xff] %v511_v4  ;;  %528 = vst [vmem:[%s1084_s8 + $0x68] sm:$0xff] %v512_v12  ;;  %v490_v13 = vpop.permute.xlu1 %489 }
 0x320   : > { %v509_v3 = vmul.f32 %v490_v13, %v1016_v14  ;;  %v510_v7 = vmul.f32 %v490_v13, %v1018_v15 }
 0x322   : > { %525 = vst [vmem:[%s1084_s8 + $0x50] sm:$0xff] %v509_v3  ;;  %526 = vst [vmem:[%s1084_s8 + $0x58] sm:$0xff] %v510_v7 }
 0x323   : > { %v498_v8 = vpop.permute.xlu1 %497 }
 0x324   : > { %v513_v9 = vmul.f32 %v498_v8, %v1028_v20  ;;  %v514_v14 = vmul.f32 %v498_v8, %v1030_v21 }
 0x326   : > { %529 = vst [vmem:[%s1084_s8 + $0x70] sm:$0xff] %v513_v9  ;;  %530 = vst [vmem:[%s1084_s8 + $0x78] sm:$0xff] %v514_v14 }
 0x327   : > { %790 = shalt.err (!%p787_p2)
}
 0x328   : > { %s791_s30 = scalar_lea.hbm %s1115_s22, 2048  ;;  %s795_s23 = scalar_lea.hbm %s1168_s3, 4096 }
 0x329   : > { %p792_p4 = scmp.ne.s32.totalorder %s1115_s22, %s791_s30  ;;  %p796_p9 = scmp.lt.u32.totalorder %s1115_s22, %s1168_s3 }
 0x32a   : > { %p797_p1 = scmp.lt.u32.totalorder %s795_s23, %s791_s30  ;;  %p799_p6 = scmp.lt.u32.totalorder %s791_s30, %s1115_s22 }
 0x32b   : > { %p793_p5 = pnand %p792_p4, %p1175_p11 }
 0x32c   : > { %p798_p3 = por %p797_p1, %p796_p9 }
 0x32d   : > { %p794_p7 = pneg %p793_p5 }
 0x32e   : > { %p800_p12 = por %p799_p6, %p798_p3 }
 0x330   : > { %p801_p13 = pnand %p800_p12, %p794_p7 }
 0x332   : > { %804 = shalt.err (!%p801_p13)
}
 0x333   : > { %s852_s7 = smov 256   ;;  %s853_s8 = smov 16  }
 0x334   : > { %692 = dma.vmem_to_hbm [thread:$0]  (%p1175_p11), %s1117_s17, 2048, %s1115_s22, %s532_s16, %s852_s7, %s852_s7, %s853_s8  }
 0x335 PF: > { %s560_s9 = sand.u32 1, %s831_s12   ;;  %p1176_p8 = scmp.ne.s32.totalorder %s1173_s25, 0 }
 0x336   : > { %p1177_p10 = scmp.ge.s32.totalorder %s843_s15, 2  ;;  %s561_s19 = scalar_lea.sflag [#allocation4], %s560_s9 }
 0x338   : > { %p699_p0 = pnand %p1177_p10, %p1176_p8 }
 0x33a   : > { %826 = dma.done.wait (!%p699_p0), %s561_s19, 2048  }
 0x33b   : > { %828 = vsyncadd (!%p699_p0), %s561_s19, 4294965248  ;;  %p16_p2 = scmp.ge.s32.totalorder %s899_s18, 4   ;;  %s1178_s12 = smov %s835_s13 }
 0x33c   : > { %s1179_s13 = smov %s839_s14  ;;  %s1180_s14 = smov %s911_s21 }
 0x33d   : > { %s1181_s15 = smov %s899_s18  ;;  %18 = sbr.rel (!%p16_p2) target bundleno = 5 (0x5), region = 77 }
 0x344   :  { %566 = vsyncpa [#allocation3], 1 }
 0x345   :  { %568 = vsyncpa [#allocation3 + $0x1], 1 }
 0x346   :  { %569 = vsyncpa [#allocation4], 1 }
 0x347   :  { %571 = vsyncpa [#allocation4 + $0x1], 1 }

</bundles_post_ra>
